<compile_context>
chip_gen: v7x
topology: tpu7x:2x2x1
jax: 0.10.0
libtpu: 0.0.40
codegen_flags: <defaults>
</compile_context>

<pallas_src>
import jax
import jax.numpy as jnp
from jax.experimental import pallas as pl
from jax.experimental.pallas import tpu as pltpu

NO_OBJ_W = 10.0
BOX_W = 10.0
NUM_CLASSES = 8
LANE = 128
SUBLANE = 8


def _yolo_loss_kernel(anc_ref, pred_ref, tgt_ref, out_ref):
    """Per-(anchor, tile) partial sums.

    anc_ref : SMEM (2*A,) f32      flattened scaled anchors [w0,h0,w1,h1,...]
    pred_ref: VMEM (5+C, R, 128)   lane-dense prediction planes for anchor a
    tgt_ref : VMEM (6,   R, 128)   lane-dense target planes for anchor a
    out_ref : VMEM (1, 128)        lanes 0..5 = [sum_bce_noobj, n_noobj,
                                    sum_obj_sq, sum_box_sq, sum_ce, n_obj]
    """
    f32 = jnp.float32
    a = pl.program_id(0)
    anc_w = anc_ref[2 * a]
    anc_h = anc_ref[2 * a + 1]

    p_obj = pred_ref[0].astype(f32)
    p_x = pred_ref[1].astype(f32)
    p_y = pred_ref[2].astype(f32)
    p_w = pred_ref[3].astype(f32)
    p_h = pred_ref[4].astype(f32)

    t_obj = tgt_ref[0].astype(f32)
    t_x = tgt_ref[1].astype(f32)
    t_y = tgt_ref[2].astype(f32)
    t_w = tgt_ref[3].astype(f32)
    t_h = tgt_ref[4].astype(f32)
    t_lbl = tgt_ref[5].astype(jnp.int32)

    obj_m = t_obj == 1.0
    noobj_m = t_obj == 0.0          # padded cells carry t_obj = -1 -> neither mask
    n_obj = jnp.sum(obj_m.astype(f32))
    n_noobj = jnp.sum(noobj_m.astype(f32))

    # ---- no-object loss numerator: BCE-with-logits against target 0 ---------
    bce = jnp.maximum(p_obj, 0.0) + jnp.log1p(jnp.exp(-jnp.abs(p_obj)))
    s_bce = jnp.sum(jnp.where(noobj_m, bce, 0.0))

    # ---- decoded predicted box ----------------------------------------------
    sx = jax.nn.sigmoid(p_x)
    sy = jax.nn.sigmoid(p_y)
    pw = jnp.exp(p_w) * anc_w
    ph = jnp.exp(p_h) * anc_h

    # ---- midpoint IoU vs target box -----------------------------------------
    b1x1 = sx - 0.5 * pw
    b1x2 = sx + 0.5 * pw
    b1y1 = sy - 0.5 * ph
    b1y2 = sy + 0.5 * ph
    b2x1 = t_x - 0.5 * t_w
    b2x2 = t_x + 0.5 * t_w
    b2y1 = t_y - 0.5 * t_h
    b2y2 = t_y + 0.5 * t_h
    inter = (jnp.maximum(jnp.minimum(b1x2, b2x2) - jnp.maximum(b1x1, b2x1), 0.0)
             * jnp.maximum(jnp.minimum(b1y2, b2y2) - jnp.maximum(b1y1, b2y1), 0.0))
    # exact divide (approx reciprocal would exceed the 1e-4 validation tolerance)
    iou = inter / (jnp.abs(pw * ph) + jnp.abs(t_w * t_h) - inter + 1e-6)

    # ---- object loss numerator ----------------------------------------------
    obj_sq = (jax.nn.sigmoid(p_obj) - iou * t_obj) ** 2
    s_obj = jnp.sum(jnp.where(obj_m, obj_sq, 0.0))

    # ---- box loss numerator (no concatenate: 4 independent SE planes) -------
    tw_log = jnp.log(t_w / anc_w + 1e-16)
    th_log = jnp.log(t_h / anc_h + 1e-16)
    box_sq = ((sx - t_x) ** 2 + (sy - t_y) ** 2
              + (p_w - tw_log) ** 2 + (p_h - th_log) ** 2)
    s_box = jnp.sum(jnp.where(obj_m, box_sq, 0.0))

    # ---- class cross-entropy numerator --------------------------------------
    num_classes = pred_ref.shape[0] - 5
    logits = [pred_ref[5 + c].astype(f32) for c in range(num_classes)]
    m = logits[0]
    for c in range(1, num_classes):
        m = jnp.maximum(m, logits[c])
    sum_exp = jnp.zeros_like(m)
    picked = jnp.zeros_like(m)
    for c in range(num_classes):
        sum_exp = sum_exp + jnp.exp(logits[c] - m)
        picked = picked + jnp.where(t_lbl == c, logits[c], 0.0)
    ce = m + jnp.log(sum_exp) - picked
    s_ce = jnp.sum(jnp.where(obj_m, ce, 0.0))

    # ---- write per-block partials (lane-dense 128-wide -> unmasked store) ---
    lane = jax.lax.broadcasted_iota(jnp.int32, (1, LANE), 1)
    out_ref[...] = (jnp.where(lane == 0, s_bce, 0.0)
                    + jnp.where(lane == 1, n_noobj, 0.0)
                    + jnp.where(lane == 2, s_obj, 0.0)
                    + jnp.where(lane == 3, s_box, 0.0)
                    + jnp.where(lane == 4, s_ce, 0.0)
                    + jnp.where(lane == 5, n_obj, 0.0))


def yolo_loss(predictions, targets, scaled_anchors, *, tile_m=16384):
    """predictions: (B, A, H, W, 5+C), targets: (B, A, H, W, 6), anchors: (A, 2)."""
    B, A, H, W, F = predictions.shape
    M = B * H * W

    # Tile (per anchor) along the flattened (b, h, w) axis: multiple of 8*128
    # so the (F, R, 128) block is sublane/lane aligned; sized well under the
    # 32 MiB scoped-VMEM default (fits v5e/v6e/v7x alike).
    min_tile = SUBLANE * LANE                      # 1024 cells
    tile_m = max(min_tile, (int(tile_m) // min_tile) * min_tile)
    tile_m = min(tile_m, pl.cdiv(M, min_tile) * min_tile)
    M_pad = pl.cdiv(M, tile_m) * tile_m
    G = M_pad // tile_m
    R = tile_m // LANE
    pad_m = M_pad - M

    # (B, A, H, W, *) -> (A, *, M) in a SINGLE transpose; pad along the last
    # (lane) axis only.  Keep the caller's dtype (cast in-kernel).
    pred_t = jnp.transpose(predictions, (1, 4, 0, 2, 3)).reshape(A, F, M)
    tgt_t = jnp.transpose(targets, (1, 4, 0, 2, 3)).reshape(A, 6, M)
    if pad_m:
        pred_t = jnp.pad(pred_t, ((0, 0), (0, 0), (0, pad_m)))
        tgt_t = jnp.pad(tgt_t, ((0, 0), (0, 0), (0, pad_m)))
        # padded cells: obj = -1 (neither object nor no-object), rest 0
        tgt_t = tgt_t.at[:, 0, M:].set(jnp.asarray(-1.0, tgt_t.dtype))

    # Feature-major, lane-dense slabs: (A, F, M_pad//128, 128)
    pred_t = pred_t.reshape(A, F, M_pad // LANE, LANE)
    tgt_t = tgt_t.reshape(A, 6, M_pad // LANE, LANE)
    anc_flat = scaled_anchors.astype(jnp.float32).reshape(-1)   # (2*A,) -> SMEM

    parts = pl.pallas_call(
        _yolo_loss_kernel,
        out_shape=jax.ShapeDtypeStruct((A, G, 1, LANE), jnp.float32),
        grid=(A, G),
        in_specs=[
            pl.BlockSpec(memory_space=pltpu.MemorySpace.SMEM),             # anchors
            pl.BlockSpec((None, F, R, LANE), lambda a, i: (a, 0, i, 0)),   # preds
            pl.BlockSpec((None, 6, R, LANE), lambda a, i: (a, 0, i, 0)),   # targets
        ],
        out_specs=pl.BlockSpec((None, None, 1, LANE), lambda a, i: (a, i, 0, 0)),
        compiler_params=pltpu.CompilerParams(
            dimension_semantics=("parallel", "parallel"),
            vmem_limit_bytes=32 * 1024 * 1024),
    )(anc_flat, pred_t, tgt_t)

    # Final ~6-element reduction + divisions in plain JAX (divide once, globally).
    s = jnp.sum(parts, axis=(0, 1, 2))
    n_noobj, n_obj = s[1], s[5]
    no_obj_loss = s[0] / n_noobj
    obj_loss = s[2] / n_obj
    box_loss = s[3] / (n_obj * 4.0)
    class_loss = s[4] / n_obj
    return NO_OBJ_W * no_obj_loss + obj_loss + BOX_W * box_loss + class_loss


def yolo_loss_ref(predictions, targets, scaled_anchors):
    """Pure-JAX reference with identical semantics (for validation)."""
    A = predictions.shape[1]
    p = predictions.astype(jnp.float32)
    t = targets.astype(jnp.float32)
    anc = scaled_anchors.reshape(1, A, 1, 1, 2).astype(jnp.float32)

    obj = t[..., 0] == 1.0
    noobj = t[..., 0] == 0.0
    p0, t0 = p[..., 0], t[..., 0]
    bce = jnp.maximum(p0, 0.0) - p0 * t0 + jnp.log1p(jnp.exp(-jnp.abs(p0)))
    no_obj_loss = jnp.sum(jnp.where(noobj, bce, 0.0)) / jnp.sum(noobj)

    sig_xy = jax.nn.sigmoid(p[..., 1:3])
    pred_wh = jnp.exp(p[..., 3:5]) * anc
    b1x1 = sig_xy[..., 0] - pred_wh[..., 0] / 2
    b1x2 = sig_xy[..., 0] + pred_wh[..., 0] / 2
    b1y1 = sig_xy[..., 1] - pred_wh[..., 1] / 2
    b1y2 = sig_xy[..., 1] + pred_wh[..., 1] / 2
    b2x1 = t[..., 1] - t[..., 3] / 2
    b2x2 = t[..., 1] + t[..., 3] / 2
    b2y1 = t[..., 2] - t[..., 4] / 2
    b2y2 = t[..., 2] + t[..., 4] / 2
    inter = jnp.maximum(jnp.minimum(b1x2, b2x2) - jnp.maximum(b1x1, b2x1), 0.0) * \
            jnp.maximum(jnp.minimum(b1y2, b2y2) - jnp.maximum(b1y1, b2y1), 0.0)
    iou = inter / (jnp.abs(pred_wh[..., 0] * pred_wh[..., 1]) +
                   jnp.abs(t[..., 3] * t[..., 4]) - inter + 1e-6)

    n_obj = jnp.sum(obj)
    obj_loss = jnp.sum(jnp.where(obj, (jax.nn.sigmoid(p0) - iou * t0) ** 2, 0.0)) / n_obj

    pred_box = jnp.concatenate([sig_xy, p[..., 3:5]], axis=-1)
    tgt_box = jnp.concatenate([t[..., 1:3], jnp.log(t[..., 3:5] / anc + 1e-16)], axis=-1)
    box_loss = jnp.sum(jnp.where(obj[..., None], (pred_box - tgt_box) ** 2, 0.0)) / (n_obj * 4.0)

    logits = p[..., 5:]
    label = t[..., 5].astype(jnp.int32)
    ce = jax.nn.logsumexp(logits, axis=-1) - \
         jnp.take_along_axis(logits, label[..., None], axis=-1)[..., 0]
    class_loss = jnp.sum(jnp.where(obj, ce, 0.0)) / n_obj

    return NO_OBJ_W * no_obj_loss + obj_loss + BOX_W * box_loss + class_loss


if __name__ == "__main__":
    B, A, H, W, C = 2, 3, 4, 4, NUM_CLASSES
    key = jax.random.PRNGKey(0)
    k_pred, k_obj, k_xy, k_wh, k_lbl, k_anc = jax.random.split(key, 6)

    predictions = jax.random.normal(k_pred, (B, A, H, W, 5 + C), dtype=jnp.float32)

    obj_flag = jax.random.bernoulli(k_obj, 0.3, (B, A, H, W)).astype(jnp.float32)
    # guarantee at least one obj and one no-obj cell
    obj_flag = obj_flag.at[0, 0, 0, 0].set(1.0).at[0, 0, 0, 1].set(0.0)
    xy = jax.random.uniform(k_xy, (B, A, H, W, 2), minval=0.05, maxval=0.95)
    wh = jax.random.uniform(k_wh, (B, A, H, W, 2), minval=0.5, maxval=3.0)
    lbl = jax.random.randint(k_lbl, (B, A, H, W, 1), 0, C).astype(jnp.float32)
    targets = jnp.concatenate([obj_flag[..., None], xy, wh, lbl], axis=-1)

    scaled_anchors = jax.random.uniform(k_anc, (3, 2), minval=0.5, maxval=2.0)

    loss_fn = jax.jit(yolo_loss)
    loss = jax.block_until_ready(loss_fn(predictions, targets, scaled_anchors))
    loss_ref = jax.block_until_ready(yolo_loss_ref(predictions, targets, scaled_anchors))

    assert jnp.isfinite(loss), f"non-finite loss: {loss}"
    assert jnp.allclose(loss, loss_ref, rtol=1e-4, atol=1e-4), (loss, loss_ref)
    print("KERNEL_OK")
</pallas_src>

<mosaic_0001>
module attributes {stable_mosaic.version = 11 : i64} {
  func.func @_yolo_loss_kernel(%arg0: i32, %arg1: i32, %arg2: memref<6xf32, #tpu.memory_space<smem>>, %arg3: memref<1x13x8x128xf32, #tpu.memory_space<vmem>>, %arg4: memref<1x6x8x128xf32, #tpu.memory_space<vmem>>, %arg5: memref<1x1x1x128xf32, #tpu.memory_space<vmem>>) attributes {dimension_semantics = [#tpu.dimension_semantics<parallel>, #tpu.dimension_semantics<parallel>], iteration_bounds = array<i64: 3, 1>, scalar_prefetch = 0 : i64, scratch_operands = 0 : i64, tpu.core_type = #tpu.core_type<tc>, window_params = [{transform_indices = @transform_0, window_bounds = array<i64: 6>}, {transform_indices = @transform_1, window_bounds = array<i64: 1, 13, 8, 128>}, {transform_indices = @transform_2, window_bounds = array<i64: 1, 6, 8, 128>}, {transform_indices = @transform_3, window_bounds = array<i64: 1, 1, 1, 128>}]} {
    %c2_i32 = arith.constant 2 : i32
    %0 = arith.muli %c2_i32, %arg0 : i32
    %1 = arith.index_cast %0 : i32 to index
    %2 = memref.load %arg2[%1] : memref<6xf32, #tpu.memory_space<smem>>
    %c2_i32_0 = arith.constant 2 : i32
    %3 = arith.muli %c2_i32_0, %arg0 : i32
    %c1_i32 = arith.constant 1 : i32
    %4 = arith.addi %3, %c1_i32 : i32
    %5 = arith.index_cast %4 : i32 to index
    %6 = memref.load %arg2[%5] : memref<6xf32, #tpu.memory_space<smem>>
    %c0 = arith.constant 0 : index
    %c0_1 = arith.constant 0 : index
    %c0_2 = arith.constant 0 : index
    %c0_3 = arith.constant 0 : index
    %7 = vector.load %arg3[%c0, %c0_1, %c0_2, %c0_3] : memref<1x13x8x128xf32, #tpu.memory_space<vmem>>, vector<1x1x8x128xf32>
    %8 = vector.shape_cast %7 : vector<1x1x8x128xf32> to vector<8x128xf32>
    %c0_4 = arith.constant 0 : index
    %c1 = arith.constant 1 : index
    %c0_5 = arith.constant 0 : index
    %c0_6 = arith.constant 0 : index
    %9 = vector.load %arg3[%c0_4, %c1, %c0_5, %c0_6] : memref<1x13x8x128xf32, #tpu.memory_space<vmem>>, vector<1x1x8x128xf32>
    %10 = vector.shape_cast %9 : vector<1x1x8x128xf32> to vector<8x128xf32>
    %c0_7 = arith.constant 0 : index
    %c2 = arith.constant 2 : index
    %c0_8 = arith.constant 0 : index
    %c0_9 = arith.constant 0 : index
    %11 = vector.load %arg3[%c0_7, %c2, %c0_8, %c0_9] : memref<1x13x8x128xf32, #tpu.memory_space<vmem>>, vector<1x1x8x128xf32>
    %12 = vector.shape_cast %11 : vector<1x1x8x128xf32> to vector<8x128xf32>
    %c0_10 = arith.constant 0 : index
    %c3 = arith.constant 3 : index
    %c0_11 = arith.constant 0 : index
    %c0_12 = arith.constant 0 : index
    %13 = vector.load %arg3[%c0_10, %c3, %c0_11, %c0_12] : memref<1x13x8x128xf32, #tpu.memory_space<vmem>>, vector<1x1x8x128xf32>
    %14 = vector.shape_cast %13 : vector<1x1x8x128xf32> to vector<8x128xf32>
    %c0_13 = arith.constant 0 : index
    %c4 = arith.constant 4 : index
    %c0_14 = arith.constant 0 : index
    %c0_15 = arith.constant 0 : index
    %15 = vector.load %arg3[%c0_13, %c4, %c0_14, %c0_15] : memref<1x13x8x128xf32, #tpu.memory_space<vmem>>, vector<1x1x8x128xf32>
    %16 = vector.shape_cast %15 : vector<1x1x8x128xf32> to vector<8x128xf32>
    %c0_16 = arith.constant 0 : index
    %c0_17 = arith.constant 0 : index
    %c0_18 = arith.constant 0 : index
    %c0_19 = arith.constant 0 : index
    %17 = vector.load %arg4[%c0_16, %c0_17, %c0_18, %c0_19] : memref<1x6x8x128xf32, #tpu.memory_space<vmem>>, vector<1x1x8x128xf32>
    %18 = vector.shape_cast %17 : vector<1x1x8x128xf32> to vector<8x128xf32>
    %c0_20 = arith.constant 0 : index
    %c1_21 = arith.constant 1 : index
    %c0_22 = arith.constant 0 : index
    %c0_23 = arith.constant 0 : index
    %19 = vector.load %arg4[%c0_20, %c1_21, %c0_22, %c0_23] : memref<1x6x8x128xf32, #tpu.memory_space<vmem>>, vector<1x1x8x128xf32>
    %20 = vector.shape_cast %19 : vector<1x1x8x128xf32> to vector<8x128xf32>
    %c0_24 = arith.constant 0 : index
    %c2_25 = arith.constant 2 : index
    %c0_26 = arith.constant 0 : index
    %c0_27 = arith.constant 0 : index
    %21 = vector.load %arg4[%c0_24, %c2_25, %c0_26, %c0_27] : memref<1x6x8x128xf32, #tpu.memory_space<vmem>>, vector<1x1x8x128xf32>
    %22 = vector.shape_cast %21 : vector<1x1x8x128xf32> to vector<8x128xf32>
    %c0_28 = arith.constant 0 : index
    %c3_29 = arith.constant 3 : index
    %c0_30 = arith.constant 0 : index
    %c0_31 = arith.constant 0 : index
    %23 = vector.load %arg4[%c0_28, %c3_29, %c0_30, %c0_31] : memref<1x6x8x128xf32, #tpu.memory_space<vmem>>, vector<1x1x8x128xf32>
    %24 = vector.shape_cast %23 : vector<1x1x8x128xf32> to vector<8x128xf32>
    %c0_32 = arith.constant 0 : index
    %c4_33 = arith.constant 4 : index
    %c0_34 = arith.constant 0 : index
    %c0_35 = arith.constant 0 : index
    %25 = vector.load %arg4[%c0_32, %c4_33, %c0_34, %c0_35] : memref<1x6x8x128xf32, #tpu.memory_space<vmem>>, vector<1x1x8x128xf32>
    %26 = vector.shape_cast %25 : vector<1x1x8x128xf32> to vector<8x128xf32>
    %c0_36 = arith.constant 0 : index
    %c5 = arith.constant 5 : index
    %c0_37 = arith.constant 0 : index
    %c0_38 = arith.constant 0 : index
    %27 = vector.load %arg4[%c0_36, %c5, %c0_37, %c0_38] : memref<1x6x8x128xf32, #tpu.memory_space<vmem>>, vector<1x1x8x128xf32>
    %28 = vector.shape_cast %27 : vector<1x1x8x128xf32> to vector<8x128xf32>
    %29 = arith.fptosi %28 : vector<8x128xf32> to vector<8x128xi32>
    %cst = arith.constant 1.000000e+00 : f32
    %30 = vector.broadcast %cst : f32 to vector<8x128xf32>
    %31 = arith.cmpf oeq, %18, %30 : vector<8x128xf32>
    %cst_39 = arith.constant 0.000000e+00 : f32
    %32 = vector.broadcast %cst_39 : f32 to vector<8x128xf32>
    %33 = arith.cmpf oeq, %18, %32 : vector<8x128xf32>
    %34 = arith.extui %31 : vector<8x128xi1> to vector<8x128xi32>
    %35 = arith.sitofp %34 : vector<8x128xi32> to vector<8x128xf32>
    %36 = vector.shape_cast %35 : vector<8x128xf32> to vector<1x8x128xf32>
    %cst_40 = arith.constant dense<0.000000e+00> : vector<1xf32>
    %37 = vector.multi_reduction <add>, %36, %cst_40 [1, 2] : vector<1x8x128xf32> to vector<1xf32>
    %38 = vector.shape_cast %37 : vector<1xf32> to vector<1x1x1xf32>
    %39 = vector.extract %38[0, 0, 0] : f32 from vector<1x1x1xf32>
    %40 = arith.extui %33 : vector<8x128xi1> to vector<8x128xi32>
    %41 = arith.sitofp %40 : vector<8x128xi32> to vector<8x128xf32>
    %42 = vector.shape_cast %41 : vector<8x128xf32> to vector<1x8x128xf32>
    %cst_41 = arith.constant dense<0.000000e+00> : vector<1xf32>
    %43 = vector.multi_reduction <add>, %42, %cst_41 [1, 2] : vector<1x8x128xf32> to vector<1xf32>
    %44 = vector.shape_cast %43 : vector<1xf32> to vector<1x1x1xf32>
    %45 = vector.extract %44[0, 0, 0] : f32 from vector<1x1x1xf32>
    %cst_42 = arith.constant 0.000000e+00 : f32
    %46 = vector.broadcast %cst_42 : f32 to vector<8x128xf32>
    %47 = arith.maximumf %8, %46 : vector<8x128xf32>
    %48 = math.absf %8 : vector<8x128xf32>
    %cst_43 = arith.constant 0.000000e+00 : f32
    %49 = vector.broadcast %cst_43 : f32 to vector<8x128xf32>
    %50 = arith.subf %49, %48 : vector<8x128xf32>
    %51 = math.exp %50 : vector<8x128xf32>
    %52 = math.log1p %51 : vector<8x128xf32>
    %53 = arith.addf %47, %52 : vector<8x128xf32>
    %cst_44 = arith.constant 0.000000e+00 : f32
    %54 = vector.broadcast %cst_44 : f32 to vector<8x128xf32>
    %55 = arith.select %33, %53, %54 : vector<8x128xi1>, vector<8x128xf32>
    %56 = vector.shape_cast %55 : vector<8x128xf32> to vector<1x8x128xf32>
    %cst_45 = arith.constant dense<0.000000e+00> : vector<1xf32>
    %57 = vector.multi_reduction <add>, %56, %cst_45 [1, 2] : vector<1x8x128xf32> to vector<1xf32>
    %58 = vector.shape_cast %57 : vector<1xf32> to vector<1x1x1xf32>
    %59 = vector.extract %58[0, 0, 0] : f32 from vector<1x1x1xf32>
    %60 = arith.negf %10 : vector<8x128xf32>
    %61 = math.exp %60 : vector<8x128xf32>
    %cst_46 = arith.constant 1.000000e+00 : f32
    %62 = vector.broadcast %cst_46 : f32 to vector<8x128xf32>
    %63 = arith.addf %62, %61 : vector<8x128xf32>
    %64 = arith.divf %62, %63 : vector<8x128xf32>
    %65 = arith.negf %12 : vector<8x128xf32>
    %66 = math.exp %65 : vector<8x128xf32>
    %cst_47 = arith.constant 1.000000e+00 : f32
    %67 = vector.broadcast %cst_47 : f32 to vector<8x128xf32>
    %68 = arith.addf %67, %66 : vector<8x128xf32>
    %69 = arith.divf %67, %68 : vector<8x128xf32>
    %70 = math.exp %14 : vector<8x128xf32>
    %71 = vector.broadcast %2 : f32 to vector<8x128xf32>
    %72 = arith.mulf %70, %71 : vector<8x128xf32>
    %73 = math.exp %16 : vector<8x128xf32>
    %74 = vector.broadcast %6 : f32 to vector<8x128xf32>
    %75 = arith.mulf %73, %74 : vector<8x128xf32>
    %cst_48 = arith.constant 5.000000e-01 : f32
    %76 = vector.broadcast %cst_48 : f32 to vector<8x128xf32>
    %77 = arith.mulf %76, %72 : vector<8x128xf32>
    %78 = arith.subf %64, %77 : vector<8x128xf32>
    %cst_49 = arith.constant 5.000000e-01 : f32
    %79 = vector.broadcast %cst_49 : f32 to vector<8x128xf32>
    %80 = arith.mulf %79, %72 : vector<8x128xf32>
    %81 = arith.addf %64, %80 : vector<8x128xf32>
    %cst_50 = arith.constant 5.000000e-01 : f32
    %82 = vector.broadcast %cst_50 : f32 to vector<8x128xf32>
    %83 = arith.mulf %82, %75 : vector<8x128xf32>
    %84 = arith.subf %69, %83 : vector<8x128xf32>
    %cst_51 = arith.constant 5.000000e-01 : f32
    %85 = vector.broadcast %cst_51 : f32 to vector<8x128xf32>
    %86 = arith.mulf %85, %75 : vector<8x128xf32>
    %87 = arith.addf %69, %86 : vector<8x128xf32>
    %cst_52 = arith.constant 5.000000e-01 : f32
    %88 = vector.broadcast %cst_52 : f32 to vector<8x128xf32>
    %89 = arith.mulf %88, %24 : vector<8x128xf32>
    %90 = arith.subf %20, %89 : vector<8x128xf32>
    %cst_53 = arith.constant 5.000000e-01 : f32
    %91 = vector.broadcast %cst_53 : f32 to vector<8x128xf32>
    %92 = arith.mulf %91, %24 : vector<8x128xf32>
    %93 = arith.addf %20, %92 : vector<8x128xf32>
    %cst_54 = arith.constant 5.000000e-01 : f32
    %94 = vector.broadcast %cst_54 : f32 to vector<8x128xf32>
    %95 = arith.mulf %94, %26 : vector<8x128xf32>
    %96 = arith.subf %22, %95 : vector<8x128xf32>
    %cst_55 = arith.constant 5.000000e-01 : f32
    %97 = vector.broadcast %cst_55 : f32 to vector<8x128xf32>
    %98 = arith.mulf %97, %26 : vector<8x128xf32>
    %99 = arith.addf %22, %98 : vector<8x128xf32>
    %100 = arith.minimumf %81, %93 : vector<8x128xf32>
    %101 = arith.maximumf %78, %90 : vector<8x128xf32>
    %102 = arith.subf %100, %101 : vector<8x128xf32>
    %cst_56 = arith.constant 0.000000e+00 : f32
    %103 = vector.broadcast %cst_56 : f32 to vector<8x128xf32>
    %104 = arith.maximumf %102, %103 : vector<8x128xf32>
    %105 = arith.minimumf %87, %99 : vector<8x128xf32>
    %106 = arith.maximumf %84, %96 : vector<8x128xf32>
    %107 = arith.subf %105, %106 : vector<8x128xf32>
    %cst_57 = arith.constant 0.000000e+00 : f32
    %108 = vector.broadcast %cst_57 : f32 to vector<8x128xf32>
    %109 = arith.maximumf %107, %108 : vector<8x128xf32>
    %110 = arith.mulf %104, %109 : vector<8x128xf32>
    %111 = arith.mulf %72, %75 : vector<8x128xf32>
    %112 = math.absf %111 : vector<8x128xf32>
    %113 = arith.mulf %24, %26 : vector<8x128xf32>
    %114 = math.absf %113 : vector<8x128xf32>
    %115 = arith.addf %112, %114 : vector<8x128xf32>
    %116 = arith.subf %115, %110 : vector<8x128xf32>
    %cst_58 = arith.constant 9.99999997E-7 : f32
    %117 = vector.broadcast %cst_58 : f32 to vector<8x128xf32>
    %118 = arith.addf %116, %117 : vector<8x128xf32>
    %119 = arith.divf %110, %118 : vector<8x128xf32>
    %120 = arith.negf %8 : vector<8x128xf32>
    %121 = math.exp %120 : vector<8x128xf32>
    %cst_59 = arith.constant 1.000000e+00 : f32
    %122 = vector.broadcast %cst_59 : f32 to vector<8x128xf32>
    %123 = arith.addf %122, %121 : vector<8x128xf32>
    %124 = arith.divf %122, %123 : vector<8x128xf32>
    %125 = arith.mulf %119, %18 : vector<8x128xf32>
    %126 = arith.subf %124, %125 : vector<8x128xf32>
    %127 = arith.mulf %126, %126 : vector<8x128xf32>
    %cst_60 = arith.constant 0.000000e+00 : f32
    %128 = vector.broadcast %cst_60 : f32 to vector<8x128xf32>
    %129 = arith.select %31, %127, %128 : vector<8x128xi1>, vector<8x128xf32>
    %130 = vector.shape_cast %129 : vector<8x128xf32> to vector<1x8x128xf32>
    %cst_61 = arith.constant dense<0.000000e+00> : vector<1xf32>
    %131 = vector.multi_reduction <add>, %130, %cst_61 [1, 2] : vector<1x8x128xf32> to vector<1xf32>
    %132 = vector.shape_cast %131 : vector<1xf32> to vector<1x1x1xf32>
    %133 = vector.extract %132[0, 0, 0] : f32 from vector<1x1x1xf32>
    %134 = vector.broadcast %2 : f32 to vector<8x128xf32>
    %135 = arith.divf %24, %134 : vector<8x128xf32>
    %cst_62 = arith.constant 1.000000e-16 : f32
    %136 = vector.broadcast %cst_62 : f32 to vector<8x128xf32>
    %137 = arith.addf %135, %136 : vector<8x128xf32>
    %138 = math.log %137 : vector<8x128xf32>
    %139 = vector.broadcast %6 : f32 to vector<8x128xf32>
    %140 = arith.divf %26, %139 : vector<8x128xf32>
    %cst_63 = arith.constant 1.000000e-16 : f32
    %141 = vector.broadcast %cst_63 : f32 to vector<8x128xf32>
    %142 = arith.addf %140, %141 : vector<8x128xf32>
    %143 = math.log %142 : vector<8x128xf32>
    %144 = arith.subf %64, %20 : vector<8x128xf32>
    %145 = arith.mulf %144, %144 : vector<8x128xf32>
    %146 = arith.subf %69, %22 : vector<8x128xf32>
    %147 = arith.mulf %146, %146 : vector<8x128xf32>
    %148 = arith.addf %145, %147 : vector<8x128xf32>
    %149 = arith.subf %14, %138 : vector<8x128xf32>
    %150 = arith.mulf %149, %149 : vector<8x128xf32>
    %151 = arith.addf %148, %150 : vector<8x128xf32>
    %152 = arith.subf %16, %143 : vector<8x128xf32>
    %153 = arith.mulf %152, %152 : vector<8x128xf32>
    %154 = arith.addf %151, %153 : vector<8x128xf32>
    %cst_64 = arith.constant 0.000000e+00 : f32
    %155 = vector.broadcast %cst_64 : f32 to vector<8x128xf32>
    %156 = arith.select %31, %154, %155 : vector<8x128xi1>, vector<8x128xf32>
    %157 = vector.shape_cast %156 : vector<8x128xf32> to vector<1x8x128xf32>
    %cst_65 = arith.constant dense<0.000000e+00> : vector<1xf32>
    %158 = vector.multi_reduction <add>, %157, %cst_65 [1, 2] : vector<1x8x128xf32> to vector<1xf32>
    %159 = vector.shape_cast %158 : vector<1xf32> to vector<1x1x1xf32>
    %160 = vector.extract %159[0, 0, 0] : f32 from vector<1x1x1xf32>
    %c0_66 = arith.constant 0 : index
    %c5_67 = arith.constant 5 : index
    %c0_68 = arith.constant 0 : index
    %c0_69 = arith.constant 0 : index
    %161 = vector.load %arg3[%c0_66, %c5_67, %c0_68, %c0_69] : memref<1x13x8x128xf32, #tpu.memory_space<vmem>>, vector<1x1x8x128xf32>
    %162 = vector.shape_cast %161 : vector<1x1x8x128xf32> to vector<8x128xf32>
    %c0_70 = arith.constant 0 : index
    %c6 = arith.constant 6 : index
    %c0_71 = arith.constant 0 : index
    %c0_72 = arith.constant 0 : index
    %163 = vector.load %arg3[%c0_70, %c6, %c0_71, %c0_72] : memref<1x13x8x128xf32, #tpu.memory_space<vmem>>, vector<1x1x8x128xf32>
    %164 = vector.shape_cast %163 : vector<1x1x8x128xf32> to vector<8x128xf32>
    %c0_73 = arith.constant 0 : index
    %c7 = arith.constant 7 : index
    %c0_74 = arith.constant 0 : index
    %c0_75 = arith.constant 0 : index
    %165 = vector.load %arg3[%c0_73, %c7, %c0_74, %c0_75] : memref<1x13x8x128xf32, #tpu.memory_space<vmem>>, vector<1x1x8x128xf32>
    %166 = vector.shape_cast %165 : vector<1x1x8x128xf32> to vector<8x128xf32>
    %c0_76 = arith.constant 0 : index
    %c8 = arith.constant 8 : index
    %c0_77 = arith.constant 0 : index
    %c0_78 = arith.constant 0 : index
    %167 = vector.load %arg3[%c0_76, %c8, %c0_77, %c0_78] : memref<1x13x8x128xf32, #tpu.memory_space<vmem>>, vector<1x1x8x128xf32>
    %168 = vector.shape_cast %167 : vector<1x1x8x128xf32> to vector<8x128xf32>
    %c0_79 = arith.constant 0 : index
    %c9 = arith.constant 9 : index
    %c0_80 = arith.constant 0 : index
    %c0_81 = arith.constant 0 : index
    %169 = vector.load %arg3[%c0_79, %c9, %c0_80, %c0_81] : memref<1x13x8x128xf32, #tpu.memory_space<vmem>>, vector<1x1x8x128xf32>
    %170 = vector.shape_cast %169 : vector<1x1x8x128xf32> to vector<8x128xf32>
    %c0_82 = arith.constant 0 : index
    %c10 = arith.constant 10 : index
    %c0_83 = arith.constant 0 : index
    %c0_84 = arith.constant 0 : index
    %171 = vector.load %arg3[%c0_82, %c10, %c0_83, %c0_84] : memref<1x13x8x128xf32, #tpu.memory_space<vmem>>, vector<1x1x8x128xf32>
    %172 = vector.shape_cast %171 : vector<1x1x8x128xf32> to vector<8x128xf32>
    %c0_85 = arith.constant 0 : index
    %c11 = arith.constant 11 : index
    %c0_86 = arith.constant 0 : index
    %c0_87 = arith.constant 0 : index
    %173 = vector.load %arg3[%c0_85, %c11, %c0_86, %c0_87] : memref<1x13x8x128xf32, #tpu.memory_space<vmem>>, vector<1x1x8x128xf32>
    %174 = vector.shape_cast %173 : vector<1x1x8x128xf32> to vector<8x128xf32>
    %c0_88 = arith.constant 0 : index
    %c12 = arith.constant 12 : index
    %c0_89 = arith.constant 0 : index
    %c0_90 = arith.constant 0 : index
    %175 = vector.load %arg3[%c0_88, %c12, %c0_89, %c0_90] : memref<1x13x8x128xf32, #tpu.memory_space<vmem>>, vector<1x1x8x128xf32>
    %176 = vector.shape_cast %175 : vector<1x1x8x128xf32> to vector<8x128xf32>
    %177 = arith.maximumf %162, %164 : vector<8x128xf32>
    %178 = arith.maximumf %177, %166 : vector<8x128xf32>
    %179 = arith.maximumf %178, %168 : vector<8x128xf32>
    %180 = arith.maximumf %179, %170 : vector<8x128xf32>
    %181 = arith.maximumf %180, %172 : vector<8x128xf32>
    %182 = arith.maximumf %181, %174 : vector<8x128xf32>
    %183 = arith.maximumf %182, %176 : vector<8x128xf32>
    %cst_91 = arith.constant 0.000000e+00 : f32
    %184 = vector.broadcast %cst_91 : f32 to vector<8x128xf32>
    %cst_92 = arith.constant 0.000000e+00 : f32
    %185 = vector.broadcast %cst_92 : f32 to vector<8x128xf32>
    %186 = arith.subf %162, %183 : vector<8x128xf32>
    %187 = math.exp %186 : vector<8x128xf32>
    %188 = arith.addf %184, %187 : vector<8x128xf32>
    %c0_i32 = arith.constant 0 : i32
    %189 = vector.broadcast %c0_i32 : i32 to vector<8x128xi32>
    %190 = arith.cmpi eq, %29, %189 : vector<8x128xi32>
    %cst_93 = arith.constant 0.000000e+00 : f32
    %191 = vector.broadcast %cst_93 : f32 to vector<8x128xf32>
    %192 = arith.select %190, %162, %191 : vector<8x128xi1>, vector<8x128xf32>
    %193 = arith.addf %185, %192 : vector<8x128xf32>
    %194 = arith.subf %164, %183 : vector<8x128xf32>
    %195 = math.exp %194 : vector<8x128xf32>
    %196 = arith.addf %188, %195 : vector<8x128xf32>
    %c1_i32_94 = arith.constant 1 : i32
    %197 = vector.broadcast %c1_i32_94 : i32 to vector<8x128xi32>
    %198 = arith.cmpi eq, %29, %197 : vector<8x128xi32>
    %cst_95 = arith.constant 0.000000e+00 : f32
    %199 = vector.broadcast %cst_95 : f32 to vector<8x128xf32>
    %200 = arith.select %198, %164, %199 : vector<8x128xi1>, vector<8x128xf32>
    %201 = arith.addf %193, %200 : vector<8x128xf32>
    %202 = arith.subf %166, %183 : vector<8x128xf32>
    %203 = math.exp %202 : vector<8x128xf32>
    %204 = arith.addf %196, %203 : vector<8x128xf32>
    %c2_i32_96 = arith.constant 2 : i32
    %205 = vector.broadcast %c2_i32_96 : i32 to vector<8x128xi32>
    %206 = arith.cmpi eq, %29, %205 : vector<8x128xi32>
    %cst_97 = arith.constant 0.000000e+00 : f32
    %207 = vector.broadcast %cst_97 : f32 to vector<8x128xf32>
    %208 = arith.select %206, %166, %207 : vector<8x128xi1>, vector<8x128xf32>
    %209 = arith.addf %201, %208 : vector<8x128xf32>
    %210 = arith.subf %168, %183 : vector<8x128xf32>
    %211 = math.exp %210 : vector<8x128xf32>
    %212 = arith.addf %204, %211 : vector<8x128xf32>
    %c3_i32 = arith.constant 3 : i32
    %213 = vector.broadcast %c3_i32 : i32 to vector<8x128xi32>
    %214 = arith.cmpi eq, %29, %213 : vector<8x128xi32>
    %cst_98 = arith.constant 0.000000e+00 : f32
    %215 = vector.broadcast %cst_98 : f32 to vector<8x128xf32>
    %216 = arith.select %214, %168, %215 : vector<8x128xi1>, vector<8x128xf32>
    %217 = arith.addf %209, %216 : vector<8x128xf32>
    %218 = arith.subf %170, %183 : vector<8x128xf32>
    %219 = math.exp %218 : vector<8x128xf32>
    %220 = arith.addf %212, %219 : vector<8x128xf32>
    %c4_i32 = arith.constant 4 : i32
    %221 = vector.broadcast %c4_i32 : i32 to vector<8x128xi32>
    %222 = arith.cmpi eq, %29, %221 : vector<8x128xi32>
    %cst_99 = arith.constant 0.000000e+00 : f32
    %223 = vector.broadcast %cst_99 : f32 to vector<8x128xf32>
    %224 = arith.select %222, %170, %223 : vector<8x128xi1>, vector<8x128xf32>
    %225 = arith.addf %217, %224 : vector<8x128xf32>
    %226 = arith.subf %172, %183 : vector<8x128xf32>
    %227 = math.exp %226 : vector<8x128xf32>
    %228 = arith.addf %220, %227 : vector<8x128xf32>
    %c5_i32 = arith.constant 5 : i32
    %229 = vector.broadcast %c5_i32 : i32 to vector<8x128xi32>
    %230 = arith.cmpi eq, %29, %229 : vector<8x128xi32>
    %cst_100 = arith.constant 0.000000e+00 : f32
    %231 = vector.broadcast %cst_100 : f32 to vector<8x128xf32>
    %232 = arith.select %230, %172, %231 : vector<8x128xi1>, vector<8x128xf32>
    %233 = arith.addf %225, %232 : vector<8x128xf32>
    %234 = arith.subf %174, %183 : vector<8x128xf32>
    %235 = math.exp %234 : vector<8x128xf32>
    %236 = arith.addf %228, %235 : vector<8x128xf32>
    %c6_i32 = arith.constant 6 : i32
    %237 = vector.broadcast %c6_i32 : i32 to vector<8x128xi32>
    %238 = arith.cmpi eq, %29, %237 : vector<8x128xi32>
    %cst_101 = arith.constant 0.000000e+00 : f32
    %239 = vector.broadcast %cst_101 : f32 to vector<8x128xf32>
    %240 = arith.select %238, %174, %239 : vector<8x128xi1>, vector<8x128xf32>
    %241 = arith.addf %233, %240 : vector<8x128xf32>
    %242 = arith.subf %176, %183 : vector<8x128xf32>
    %243 = math.exp %242 : vector<8x128xf32>
    %244 = arith.addf %236, %243 : vector<8x128xf32>
    %c7_i32 = arith.constant 7 : i32
    %245 = vector.broadcast %c7_i32 : i32 to vector<8x128xi32>
    %246 = arith.cmpi eq, %29, %245 : vector<8x128xi32>
    %cst_102 = arith.constant 0.000000e+00 : f32
    %247 = vector.broadcast %cst_102 : f32 to vector<8x128xf32>
    %248 = arith.select %246, %176, %247 : vector<8x128xi1>, vector<8x128xf32>
    %249 = arith.addf %241, %248 : vector<8x128xf32>
    %250 = math.log %244 : vector<8x128xf32>
    %251 = arith.addf %183, %250 : vector<8x128xf32>
    %252 = arith.subf %251, %249 : vector<8x128xf32>
    %cst_103 = arith.constant 0.000000e+00 : f32
    %253 = vector.broadcast %cst_103 : f32 to vector<8x128xf32>
    %254 = arith.select %31, %252, %253 : vector<8x128xi1>, vector<8x128xf32>
    %255 = vector.shape_cast %254 : vector<8x128xf32> to vector<1x8x128xf32>
    %cst_104 = arith.constant dense<0.000000e+00> : vector<1xf32>
    %256 = vector.multi_reduction <add>, %255, %cst_104 [1, 2] : vector<1x8x128xf32> to vector<1xf32>
    %257 = vector.shape_cast %256 : vector<1xf32> to vector<1x1x1xf32>
    %258 = vector.extract %257[0, 0, 0] : f32 from vector<1x1x1xf32>
    %259 = tpu.iota {dimensions = array<i32: 1>} : vector<1x128xi32>
    %c0_i32_105 = arith.constant 0 : i32
    %260 = vector.broadcast %c0_i32_105 : i32 to vector<1x128xi32>
    %261 = arith.cmpi eq, %259, %260 : vector<1x128xi32>
    %cst_106 = arith.constant 0.000000e+00 : f32
    %262 = vector.broadcast %59 : f32 to vector<1x128xf32>
    %263 = vector.broadcast %cst_106 : f32 to vector<1x128xf32>
    %264 = arith.select %261, %262, %263 : vector<1x128xi1>, vector<1x128xf32>
    %c1_i32_107 = arith.constant 1 : i32
    %265 = vector.broadcast %c1_i32_107 : i32 to vector<1x128xi32>
    %266 = arith.cmpi eq, %259, %265 : vector<1x128xi32>
    %cst_108 = arith.constant 0.000000e+00 : f32
    %267 = vector.broadcast %45 : f32 to vector<1x128xf32>
    %268 = vector.broadcast %cst_108 : f32 to vector<1x128xf32>
    %269 = arith.select %266, %267, %268 : vector<1x128xi1>, vector<1x128xf32>
    %270 = arith.addf %264, %269 : vector<1x128xf32>
    %c2_i32_109 = arith.constant 2 : i32
    %271 = vector.broadcast %c2_i32_109 : i32 to vector<1x128xi32>
    %272 = arith.cmpi eq, %259, %271 : vector<1x128xi32>
    %cst_110 = arith.constant 0.000000e+00 : f32
    %273 = vector.broadcast %133 : f32 to vector<1x128xf32>
    %274 = vector.broadcast %cst_110 : f32 to vector<1x128xf32>
    %275 = arith.select %272, %273, %274 : vector<1x128xi1>, vector<1x128xf32>
    %276 = arith.addf %270, %275 : vector<1x128xf32>
    %c3_i32_111 = arith.constant 3 : i32
    %277 = vector.broadcast %c3_i32_111 : i32 to vector<1x128xi32>
    %278 = arith.cmpi eq, %259, %277 : vector<1x128xi32>
    %cst_112 = arith.constant 0.000000e+00 : f32
    %279 = vector.broadcast %160 : f32 to vector<1x128xf32>
    %280 = vector.broadcast %cst_112 : f32 to vector<1x128xf32>
    %281 = arith.select %278, %279, %280 : vector<1x128xi1>, vector<1x128xf32>
    %282 = arith.addf %276, %281 : vector<1x128xf32>
    %c4_i32_113 = arith.constant 4 : i32
    %283 = vector.broadcast %c4_i32_113 : i32 to vector<1x128xi32>
    %284 = arith.cmpi eq, %259, %283 : vector<1x128xi32>
    %cst_114 = arith.constant 0.000000e+00 : f32
    %285 = vector.broadcast %258 : f32 to vector<1x128xf32>
    %286 = vector.broadcast %cst_114 : f32 to vector<1x128xf32>
    %287 = arith.select %284, %285, %286 : vector<1x128xi1>, vector<1x128xf32>
    %288 = arith.addf %282, %287 : vector<1x128xf32>
    %c5_i32_115 = arith.constant 5 : i32
    %289 = vector.broadcast %c5_i32_115 : i32 to vector<1x128xi32>
    %290 = arith.cmpi eq, %259, %289 : vector<1x128xi32>
    %cst_116 = arith.constant 0.000000e+00 : f32
    %291 = vector.broadcast %39 : f32 to vector<1x128xf32>
    %292 = vector.broadcast %cst_116 : f32 to vector<1x128xf32>
    %293 = arith.select %290, %291, %292 : vector<1x128xi1>, vector<1x128xf32>
    %294 = arith.addf %288, %293 : vector<1x128xf32>
    %c0_117 = arith.constant 0 : index
    %c0_118 = arith.constant 0 : index
    %c0_119 = arith.constant 0 : index
    %c0_120 = arith.constant 0 : index
    %295 = vector.load %arg5[%c0_117, %c0_118, %c0_119, %c0_120] : memref<1x1x1x128xf32, #tpu.memory_space<vmem>>, vector<1x1x1x128xf32>
    %296 = vector.shape_cast %295 : vector<1x1x1x128xf32> to vector<1x128xf32>
    %297 = vector.shape_cast %294 : vector<1x128xf32> to vector<1x1x1x128xf32>
    tpu.vector_store %arg5[%c0_117, %c0_118, %c0_119, %c0_120], %297 {strides = array<i32>} : memref<1x1x1x128xf32, #tpu.memory_space<vmem>>, vector<1x1x1x128xf32>,
    return
  }
  func.func @transform_0(%arg0: i32, %arg1: i32) -> i32 {
    %c0_i32 = arith.constant 0 : i32
    %c0_i32_0 = arith.constant 0 : i32
    return %c0_i32 : i32
  }
  func.func @transform_1(%arg0: i32, %arg1: i32) -> (i32, i32, i32, i32) {
    %c0_i32 = arith.constant 0 : i32
    %c0_i32_0 = arith.constant 0 : i32
    %c0_i32_1 = arith.constant 0 : i32
    return %arg0, %c0_i32, %arg1, %c0_i32_0 : i32, i32, i32, i32
  }
  func.func @transform_2(%arg0: i32, %arg1: i32) -> (i32, i32, i32, i32) {
    %c0_i32 = arith.constant 0 : i32
    %c0_i32_0 = arith.constant 0 : i32
    %c0_i32_1 = arith.constant 0 : i32
    return %arg0, %c0_i32, %arg1, %c0_i32_0 : i32, i32, i32, i32
  }
  func.func @transform_3(%arg0: i32, %arg1: i32) -> (i32, i32, i32, i32) {
    %c0_i32 = arith.constant 0 : i32
    %c0_i32_0 = arith.constant 0 : i32
    %c0_i32_1 = arith.constant 0 : i32
    return %arg0, %arg1, %c0_i32, %c0_i32_0 : i32, i32, i32, i32
  }
}

</mosaic_0001>

<bundles_post_ra>
// kernel: yolo_loss.1
= control target key start
LH: loop header
LB: loop body
LE: loop exit
PB: predicated region body
PF: predicated region fallthrough
CT: control target
= control target key end

     0   :  { %8 = vsyncpa [#allocation3], 0  ;;  %s837_s12 = smov 0   ;;  %s839_s13 = smov 0   ;;  %s1087_s0 = inlined_call_operand.vmem [shape: f32[6], index: 0, kind: input, shape index: {}]   ;;  %s1088_s1 = inlined_call_operand.vmem [shape: f32[3,13,8,128], index: 1, kind: input, shape index: {}]   ;;  %s1089_s2 = inlined_call_operand.vmem [shape: f32[3,6,8,128], index: 2, kind: input, shape index: {}]   ;;  %s1090_s3 = inlined_call_operand.vmem [shape: f32[3,1,1,128], index: 3, kind: output, shape index: {}]  }
   0x1   :  { %s841_s14 = smov 0  }
   0x2 LB: > { %s638_s15 = sadd.s32 4294967295, %s813_s14   ;;  %s26_s16 = sadd.s32 1, %s809_s13  ;;  %s813_s14 = sphi %s841_s14, %s14_s14   ;;  %s809_s13 = sphi %s839_s13, %s1096_s13   ;;  %s805_s12 = sphi %s837_s12, %s1095_s12  }
   0x3   : > { %p28_p0 = scmp.ge.s32.totalorder %s26_s16, 3  ;;  %p640_p1 = scmp.ge.s32.totalorder %s813_s14, 1 }
   0x4   : > { %p136_p2 = scmp.lt.s32.totalorder %s813_s14, 4  ;;  %p862_p4 = scmp.eq.s32.totalorder %s638_s15, 0 }
   0x5   : > { %s1098_s16 = smov (%p28_p0, %s26_s16), 0  ;;  %s149_s21 = sshll.u32 %s1087_s0, 4  ;;  %s150_s21 = int_to_ptr.vmem [resolvable:$true] %s149_s21 }
   0x6   : > { %p858_p3 = pnand %p640_p1, %p136_p2  ;;  %s772_s22 = scalar_lea.vmem %s150_s21, 16 }
   0x7   : > { %p773_p7 = scmp.ne.s32.totalorder %s150_s21, %s772_s22  ;;  %p780_p11 = scmp.lt.s32.totalorder %s150_s21, %s150_s21 }
   0x8   : > { %p692_p5 = pneg %p858_p3  ;;  %p781_p12 = scmp.lt.s32.totalorder %s772_s22, %s772_s22 }
   0xa   : > { %p693_p6 = pnand %p862_p4, %p692_p5  ;;  %p782_p13 = por %p781_p12, %p780_p11 }
   0xc   : > { %p774_p8 = pneg %p693_p6 }
   0xe   : > { %p775_p9 = pnand %p774_p8, %p773_p7 }
  0x10   : > { %p776_p10 = pneg %p775_p9 }
  0x12   : > { %p783_p0 = pnand %p782_p13, %p776_p10 }
  0x14   : > { %786 = shalt.err (!%p783_p0)
}
  0x15   : > { %s815_s23 = smov [#allocation2]   ;;  %184 = sbr.rel (%p858_p3) target bundleno = 318 (0x13e), region = 32 }
  0x16   : > { %695 = dma.vmem_to_smem (!%p693_p6), %s150_s21, 16, %s815_s23, [#allocation3]  }
  0x1c   : > { %800 = dma.done.wait (%p862_p4), [#allocation3], 16  }
  0x1d   : > { %802 = vsyncadd (%p862_p4), [#allocation3], 4294967280 }
  0x1e   : > { %190 = sfence }
  0x1f   : > { %p221_p1 = scmp.lt.s32.totalorder %s805_s12, 2  ;;  %s647_s24 = sshll.u32 %s805_s12, 1  ;;  %v816_v5 = vmov 0.0  }
  0x20   : > { %s881_s25 = sld [smem:[#allocation2 + %s647_s24]]  ;;  %s245_s26 = sadd.s32 1, %s647_s24 }
  0x21   : > { %s1100_s12 = smov (!%p221_p1, %s805_s12), 2  ;;  %s886_s27 = sld [smem:[#allocation2 + %s245_s26]] }
  0x22   : > { %s673_s28 = smul.u32 48, %s1100_s12  ;;  %s242_s21 = scalar_lea.vmem %s1090_s3, %s1100_s12 }
  0x23   : > { %s672_s29 = smul.u32 104, %s1100_s12 }
  0x24   : > { %s893_s5 = scalar_lea.vmem %s1089_s2, %s673_s28 }
  0x25   : > { %v896_v0 = vld [vmem:[%s893_s5] sm:$0xff]  ;;  %s901_s8 = scalar_lea.vmem %s1088_s1, %s672_s29  ;;  %v656_v22 = vld [vmem:[%s893_s5 + $0x28] sm:$0xff]  ;;  %v654_v25 = vld [vmem:[%s893_s5 + $0x18] sm:$0xff] }
  0x26   : > { %v331_v1 = vstv %s881_s25  ;;  %vm268_vm0 = vcmp.eq.f32.partialorder %v896_v0, 1.0  ;;  %vm269_vm1 = vcmp.eq.f32.partialorder %v896_v0, 0.0  ;;  %v907_v2 = vld [vmem:[%s901_s8] sm:$0xff]  ;;  %v648_v3 = vld [vmem:[%s901_s8 + $0x8] sm:$0xff]  ;;  %v649_v4 = vld [vmem:[%s901_s8 + $0x10] sm:$0xff]  ;;  %v674_v28 = vtrunc.f32 %v656_v22 }
  0x27   : > { %724 = vrcp.f32 %v331_v1  ;;  %v657_v6 = vsel %vm268_vm0, 1.0, %v816_v5  ;;  %v293_v7 = vand.u32 2147483647, %v907_v2  ;;  %v917_v8 = vld [vmem:[%s901_s8 + $0x18] sm:$0xff]  ;;  %v658_v9 = vsel %vm269_vm1, 1.0, %v816_v5  ;;  %v922_v10 = vld [vmem:[%s901_s8 + $0x20] sm:$0xff] }
  0x28   : > { %272 = vadd.xlane.f32.xlu0 %v657_v6  ;;  %v335_v11 = vstv %s886_s27  ;;  %v659_v13 = vmul.f32 -1.442695, %v648_v3  ;;  %v660_v14 = vmul.f32 -1.442695, %v649_v4  ;;  %v329_v15 = vmul.f32 1.442695, %v917_v8 }
  0x29   : > { %v294_v12 = vsub.f32 0.0, %v293_v7  ;;  %726 = vrcp.f32 %v335_v11  ;;  %v929_v16 = vld [vmem:[%s901_s8 + $0x28] sm:$0xff]  ;;  %v333_v18 = vmul.f32 1.442695, %v922_v10  ;;  %v933_v19 = vld [vmem:[%s901_s8 + $0x30] sm:$0xff]  ;;  %v936_v20 = vld [vmem:[%s901_s8 + $0x38] sm:$0xff]  ;;  %v966_v41 = vcvt.f32.s32 %v674_v28 }
  0x2a   : > { %728 = vpow2.f32 %v659_v13  ;;  %v433_v21 = vmax.f32 %v929_v16, %v933_v19  ;;  %v942_v23 = vld [vmem:[%s901_s8 + $0x40] sm:$0xff]  ;;  %v947_v26 = vld [vmem:[%s901_s8 + $0x48] sm:$0xff]  ;;  %v952_v32 = vld [vmem:[%s901_s8 + $0x50] sm:$0xff]  ;;  %v661_v33 = vmul.f32 -1.442695, %v907_v2  ;;  %v955_v34 = vmul.f32 0.5, %v654_v25 }
  0x2b   : > { %v295_v17 = vmul.f32 1.442695, %v294_v12  ;;  %730 = vpow2.f32 %v660_v14  ;;  %v655_v29 = vld [vmem:[%s893_s5 + $0x20] sm:$0xff]  ;;  %v959_v37 = vld [vmem:[%s893_s5 + $0x8] sm:$0xff]  ;;  %v964_v40 = vld [vmem:[%s901_s8 + $0x58] sm:$0xff]  ;;  %v292_v46 = vmax.f32 %v907_v2, 0.0 }
  0x2c   : > { %283 = vadd.xlane.f32.xlu0 %v658_v9  ;;  %v434_v24 = vmax.f32 %v433_v21, %v936_v20  ;;  %v961_v38 = vmul.f32 0.5, %v655_v29  ;;  %v969_v42 = vld [vmem:[%s893_s5 + $0x10] sm:$0xff]  ;;  %v973_v47 = vmul.f32 %v655_v29, %v654_v25  ;;  %v344_v50 = vsub.f32 %v959_v37, %v955_v34  ;;  %v978_v51 = vld [vmem:[%s901_s8 + $0x60] sm:$0xff] }
  0x2d   : > { %732 = vpow2.f32 %v295_v17  ;;  %v983_v55 = vadd.f32 %v959_v37, %v955_v34  ;;  %vm444_vm2 = vcmp.eq.s32.totalorder %v966_v41, 0  ;;  %vm451_vm3 = vcmp.eq.s32.totalorder %v966_v41, 1 }
  0x2e   : > { %734 = vpow2.f32 %v329_v15  ;;  %v435_v30 = vmax.f32 %v434_v24, %v942_v23  ;;  %v347_v56 = vsub.f32 %v969_v42, %v961_v38  ;;  %v990_v62 = vadd.f32 %v969_v42, %v961_v38 }
  0x2f   : > { %736 = vpow2.f32 %v333_v18  ;;  %v361_v63 = vand.u32 2147483647, %v973_v47  ;;  %v1004_v7 = vsel %vm444_vm2, %v929_v16, 0.0  ;;  %vm458_vm5 = vcmp.eq.s32.totalorder %v966_v41, 2 }
  0x30   : > { %v436_v35 = vmax.f32 %v435_v30, %v947_v26  ;;  %vm465_vm6 = vcmp.eq.s32.totalorder %v966_v41, 3  ;;  %vm472_vm7 = vcmp.eq.s32.totalorder %v966_v41, 4  ;;  %vm479_vm8 = vcmp.eq.s32.totalorder %v966_v41, 5 }
  0x31   : > { %v725_v27 = vpop.eup %724  ;;  %vm486_vm9 = vcmp.eq.s32.totalorder %v966_v41, 6  ;;  %vm493_vm10 = vcmp.eq.s32.totalorder %v966_v41, 7 }
  0x32   : > { %v387_v31 = vmul.f32 %v725_v27, %v654_v25  ;;  %v437_v44 = vmax.f32 %v436_v35, %v952_v32 }
  0x33   : > { %v727_v36 = vpop.eup %726 }
  0x34   : > { %v388_v39 = vadd.f32 1e-16, %v387_v31  ;;  %v392_v43 = vmul.f32 %v727_v36, %v655_v29  ;;  %v729_v45 = vpop.eup %728  ;;  %v438_v52 = vmax.f32 %v437_v44, %v964_v40 }
  0x35   : > { %v731_v48 = vpop.eup %730  ;;  %v320_v49 = vadd.f32 1.0, %v729_v45 }
  0x36   : > { %738 = vlog2.f32 %v388_v39  ;;  %v326_v54 = vadd.f32 1.0, %v731_v48  ;;  %v393_v57 = vadd.f32 1e-16, %v392_v43  ;;  %v994_v3 = vmax.f32 %v438_v52, %v978_v51 }
  0x37   : > { %740 = vpow2.f32 %v661_v33  ;;  %v733_v53 = vpop.eup %732 }
  0x38   : > { %v735_v58 = vpop.eup %734  ;;  %v297_v59 = vadd.f32 1.0, %v733_v53  ;;  %v300_v60 = vmul.f32 -0.5, %v733_v53  ;;  %742 = vrcp.f32 %v320_v49  ;;  %v440_v6 = vsub.f32 %v929_v16, %v994_v3 }
  0x39   : > { %v737_v61 = vpop.eup %736  ;;  %744 = vrcp.f32 %v326_v54  ;;  %v332_v4 = vmul.f32 %v735_v58, %v331_v1  ;;  %v447_v9 = vsub.f32 %v933_v19, %v994_v3  ;;  %v303_v13 = vand.u32 2147483647, %v733_v53 }
  0x3a   : > { %746 = vlog2.f32 %v297_v59  ;;  %v336_v5 = vmul.f32 %v737_v61, %v335_v11  ;;  %v301_v12 = vadd.f32 1.0, %v300_v60  ;;  %v454_v1 = vsub.f32 %v936_v20, %v994_v3 }
  0x3b   : > { %748 = vlog2.f32 %v393_v57  ;;  %v441_v15 = vmul.f32 1.442695, %v440_v6  ;;  %v448_v11 = vmul.f32 1.442695, %v447_v9  ;;  %v461_v17 = vsub.f32 %v942_v23, %v994_v3 }
  0x3c   : > { %v358_v14 = vmul.f32 %v336_v5, %v332_v4  ;;  %v468_v18 = vsub.f32 %v947_v26, %v994_v3  ;;  %v1015_v16 = vsel %vm451_vm3, %v933_v19, 0.0  ;;  %v455_v21 = vmul.f32 1.442695, %v454_v1 }
  0x3d   : > { %v475_v22 = vsub.f32 %v952_v32, %v994_v3  ;;  %v482_v24 = vsub.f32 %v964_v40, %v994_v3  ;;  %v337_v27 = vmul.f32 0.5, %v332_v4  ;;  %750 = vpow2.f32 %v441_v15 }
  0x3e   : > { %v462_v28 = vmul.f32 1.442695, %v461_v17  ;;  %v469_v29 = vmul.f32 1.442695, %v468_v18  ;;  %vm1023_vm4 = vcmp.lt.f32.partialorder %v303_v13, 0.0004427343  ;;  %752 = vpow2.f32 %v448_v11 }
  0x3f   : > { %v340_v33 = vmul.f32 0.5, %v336_v5  ;;  %v302_v35 = vmul.f32 %v733_v53, %v301_v12  ;;  %v359_v36 = vand.u32 2147483647, %v358_v14  ;;  %754 = vpow2.f32 %v455_v21 }
  0x40   : > { %v739_v25 = vpop.eup %738  ;;  %v476_v39 = vmul.f32 1.442695, %v475_v22  ;;  %756 = vpow2.f32 %v462_v28  ;;  %v483_v45 = vmul.f32 1.442695, %v482_v24  ;;  %v489_v48 = vsub.f32 %v978_v51, %v994_v3 }
  0x41   : > { %v1021_v30 = vpop.eup %740  ;;  %v390_v19 = vmul.f32 0.6931472, %v739_v25  ;;  %758 = vpow2.f32 %v469_v29  ;;  %v453_v47 = vadd.f32 %v1015_v16, %v1004_v7  ;;  %v459_v29 = vsel %vm458_vm5, %v936_v20, 0.0 }
  0x42   : > { %v743_v43 = vpop.eup %742  ;;  %760 = vpow2.f32 %v476_v39  ;;  %v490_v17 = vmul.f32 1.442695, %v489_v48  ;;  %v466_v7 = vsel %vm465_vm6, %v942_v23, 0.0 }
  0x43   : > { %v401_v44 = vsub.f32 %v917_v8, %v390_v19  ;;  %v745_v49 = vpop.eup %744  ;;  %v396_v52 = vsub.f32 %v743_v43, %v959_v37  ;;  %v338_v54 = vsub.f32 %v743_v43, %v337_v27  ;;  %v339_v57 = vadd.f32 %v743_v43, %v337_v27 }
  0x44   : > { %v747_v58 = vpop.eup %746  ;;  %v398_v53 = vsub.f32 %v745_v49, %v969_v42  ;;  %v341_v60 = vsub.f32 %v745_v49, %v340_v33  ;;  %v342_v61 = vadd.f32 %v745_v49, %v340_v33  ;;  %762 = vpow2.f32 %v483_v45 }
  0x45   : > { %v402_v59 = vmul.f32 %v401_v44, %v401_v44  ;;  %v749_v4 = vpop.eup %748  ;;  %v299_v5 = vmul.f32 0.6931472, %v747_v58  ;;  %v397_v8 = vmul.f32 %v396_v52, %v396_v52  ;;  %v349_v6 = vmin.f32 %v339_v57, %v983_v55 }
  0x46   : > { %v350_v9 = vmax.f32 %v338_v54, %v344_v50  ;;  %v395_v12 = vmul.f32 0.6931472, %v749_v4  ;;  %v399_v13 = vmul.f32 %v398_v53, %v398_v53  ;;  %v353_v14 = vmin.f32 %v342_v61, %v990_v62 }
  0x47   : > { %v354_v1 = vmax.f32 %v341_v60, %v347_v56  ;;  %v305_v15 = vsel %vm1023_vm4, %v302_v35, %v299_v5  ;;  %v751_v50 = vpop.eup %750  ;;  %v362_v62 = vadd.f32 %v361_v63, %v359_v36  ;;  %764 = vpow2.f32 %v490_v17 }
  0x48   : > { %v351_v11 = vsub.f32 %v349_v6, %v350_v9  ;;  %v306_v55 = vadd.f32 %v305_v15, %v292_v46  ;;  %v400_v18 = vadd.f32 %v399_v13, %v397_v8  ;;  %v404_v34 = vsub.f32 %v922_v10, %v395_v12  ;;  %v753_v38 = vpop.eup %752 }
  0x49   : > { %v355_v37 = vsub.f32 %v353_v14, %v354_v1  ;;  %v755_v46 = vpop.eup %754  ;;  %v450_v24 = vadd.f32 %v753_v38, %v751_v50  ;;  %v370_v35 = vadd.f32 1.0, %v1021_v30  ;;  %v460_v39 = vadd.f32 %v459_v29, %v453_v47 }
  0x4a   : > { %v352_v21 = vmax.f32 %v351_v11, 0.0  ;;  %v307_v42 = vsel %vm269_vm1, %v306_v55, 0.0  ;;  %v403_v56 = vadd.f32 %v402_v59, %v400_v18  ;;  %v405_v22 = vmul.f32 %v404_v34, %v404_v34  ;;  %v757_v10 = vpop.eup %756 }
  0x4b   : > { %v356_v2 = vmax.f32 %v355_v37, 0.0  ;;  %308 = vadd.xlane.f32.xlu1 %v307_v42  ;;  %v759_v63 = vpop.eup %758  ;;  %v457_v28 = vadd.f32 %v755_v46, %v450_v24  ;;  %v467_v45 = vadd.f32 %v466_v7, %v460_v39  ;;  %v473_v49 = vsel %vm472_vm7, %v947_v26, 0.0 }
  0x4c   : > { %v406_v25 = vadd.f32 %v405_v22, %v403_v56  ;;  %v761_v43 = vpop.eup %760  ;;  %v480_v57 = vsel %vm479_vm8, %v952_v32, 0.0  ;;  %v487_v59 = vsel %vm486_vm9, %v964_v40, 0.0  ;;  %v494_v5 = vsel %vm493_vm10, %v978_v51, 0.0 }
  0x4d   : > { %v357_v27 = vmul.f32 %v356_v2, %v352_v21  ;;  %v464_v33 = vadd.f32 %v757_v10, %v457_v28  ;;  %v474_v54 = vadd.f32 %v473_v49, %v467_v45  ;;  %v510_v49 = vlaneseq }
  0x4e   : > { %v407_v31 = vsel %vm268_vm0, %v406_v25, 0.0  ;;  %v763_v20 = vpop.eup %762 }
  0x4f   : > { %v363_v19 = vsub.f32 %v362_v62, %v357_v27  ;;  %408 = vadd.xlane.f32.xlu0 %v407_v31  ;;  %v471_v16 = vadd.f32 %v759_v63, %v464_v33  ;;  %v481_v58 = vadd.f32 %v480_v57, %v474_v54 }
  0x51   : > { %v364_v36 = vadd.f32 1e-06, %v363_v19  ;;  %v478_v44 = vadd.f32 %v761_v43, %v471_v16  ;;  %v765_v48 = vpop.eup %764  ;;  %v488_v61 = vadd.f32 %v487_v59, %v481_v58 }
  0x53   : > { %766 = vrcp.f32 %v364_v36  ;;  %v485_v52 = vadd.f32 %v763_v20, %v478_v44  ;;  %v495_v32 = vadd.f32 %v494_v5, %v488_v61 }
  0x54   : > { %768 = vrcp.f32 %v370_v35 }
  0x55   : > { %v492_v30 = vadd.f32 %v765_v48, %v485_v52  ;;  %v511_v52 = vand.u32 127, %v510_v49 }
  0x57   : > { %770 = vlog2.f32 %v492_v30  ;;  %vm515_vm11 = vcmp.eq.s32.totalorder %v511_v52, 1  ;;  %vm512_vm12 = vcmp.eq.s32.totalorder %v511_v52, 0  ;;  %vm519_vm13 = vcmp.eq.s32.totalorder %v511_v52, 2 }
  0x58   : > { %vm523_vm14 = vcmp.eq.s32.totalorder %v511_v52, 3  ;;  %vm527_vm15 = vcmp.eq.s32.totalorder %v511_v52, 4 }
  0x5d   : > { %v767_v23 = vpop.eup %766 }
  0x5e   : > { %v366_v53 = vmul.f32 %v767_v23, %v357_v27  ;;  %v769_v60 = vpop.eup %768 }
  0x60   : > { %v373_v26 = vmul.f32 %v366_v53, %v896_v0 }
  0x61   : > { %v771_v8 = vpop.eup %770 }
  0x62   : > { %v374_v4 = vsub.f32 %v769_v60, %v373_v26  ;;  %v497_v9 = vmul.f32 0.6931472, %v771_v8 }
  0x64   : > { %v375_v6 = vmul.f32 %v374_v4, %v374_v4  ;;  %v498_v13 = vadd.f32 %v497_v9, %v994_v3 }
  0x66   : > { %v376_v12 = vsel %vm268_vm0, %v375_v6, 0.0  ;;  %v499_v40 = vsub.f32 %v498_v13, %v495_v32 }
  0x67   : > { %377 = vadd.xlane.f32.xlu1 %v376_v12 }
  0x68   : > { %v500_v41 = vsel %vm268_vm0, %v499_v40, 0.0  ;;  %vm531_vm0 = vcmp.eq.s32.totalorder %v511_v52, 5 }
  0x6b   : > { %501 = vadd.xlane.f32.xlu1 %v500_v41 }
  0xb5   : > { %v273_v14 = vpop.xlane.xlu0 %272 }
  0xb6   : > { %v274_v1 = vrot.slane %v273_v14, 4 }
  0xb8   : > { %v275_v15 = vadd.f32 %v274_v1, %v273_v14 }
  0xb9   : > { %v284_v11 = vpop.xlane.xlu0 %283 }
  0xba   : > { %v276_v51 = vrot.slane %v275_v15, 2  ;;  %v285_v17 = vrot.slane %v284_v11, 4 }
  0xbc   : > { %v286_v55 = vadd.f32 %v285_v17, %v284_v11  ;;  %v277_v18 = vadd.f32 %v276_v51, %v275_v15 }
  0xbe   : > { %v287_v34 = vrot.slane %v286_v55, 2  ;;  %v278_v37 = vrot.slane %v277_v18, 1 }
  0xc0   : > { %v279_v50 = vadd.f32 %v278_v37, %v277_v18  ;;  %v288_v21 = vadd.f32 %v287_v34, %v286_v55 }
  0xc2   : > { %676 = vpush %v279_v50  ;;  %v289_v62 = vrot.slane %v288_v21, 1 }
  0xc4   : > { %v290_v3 = vadd.f32 %v289_v62, %v288_v21 }
  0xc6   : > { %678 = vpush %v290_v3 }
  0xd8   : > { %v309_v38 = vpop.xlane.xlu1 %308 }
  0xd9   : > { %v310_v0 = vrot.slane %v309_v38, 4 }
  0xdb   : > { %v311_v42 = vadd.f32 %v310_v0, %v309_v38 }
  0xdc   : > { %v409_v24 = vpop.xlane.xlu0 %408 }
  0xdd   : > { %v312_v56 = vrot.slane %v311_v42, 2  ;;  %v410_v10 = vrot.slane %v409_v24, 4 }
  0xdf   : > { %v313_v22 = vadd.f32 %v312_v56, %v311_v42  ;;  %v411_v25 = vadd.f32 %v410_v10, %v409_v24 }
  0xe1   : > { %v314_v2 = vrot.slane %v313_v22, 1  ;;  %v412_v27 = vrot.slane %v411_v25, 2 }
  0xe3   : > { %v315_v46 = vadd.f32 %v314_v2, %v313_v22  ;;  %v413_v29 = vadd.f32 %v412_v27, %v411_v25 }
  0xe5   : > { %680 = vpush %v315_v46  ;;  %v414_v39 = vrot.slane %v413_v29, 1 }
  0xe7   : > { %v415_v44 = vadd.f32 %v414_v39, %v413_v29 }
  0xf3   : > { %s677_s9 = spop %676 }
  0xf4   : > { %v378_v47 = vpop.xlane.xlu1 %377  ;;  %v532_v5 = vstv %s677_s9 }
  0xf5   : > { %v379_v63 = vrot.slane %v378_v47, 4  ;;  %v533_v9 = vsel %vm531_vm0, %v532_v5, 0.0 }
  0xf7   : > { %v380_v28 = vadd.f32 %v379_v63, %v378_v47  ;;  %s679_s10 = spop %678 }
  0xf8   : > { %v502_v19 = vpop.xlane.xlu1 %501  ;;  %v516_v30 = vstv %s679_s10 }
  0xf9   : > { %v381_v31 = vrot.slane %v380_v28, 2  ;;  %v503_v33 = vrot.slane %v502_v19, 4  ;;  %v517_v57 = vsel %vm515_vm11, %v516_v30, 0.0 }
  0xfb   : > { %v382_v35 = vadd.f32 %v381_v31, %v380_v28  ;;  %v504_v36 = vadd.f32 %v503_v33, %v502_v19 }
  0xfd   : > { %v383_v43 = vrot.slane %v382_v35, 1  ;;  %v505_v7 = vrot.slane %v504_v36, 2 }
  0xff   : > { %v384_v16 = vadd.f32 %v383_v43, %v382_v35  ;;  %v506_v20 = vadd.f32 %v505_v7, %v504_v36 }
 0x101   : > { %682 = vpush %v384_v16  ;;  %v507_v45 = vrot.slane %v506_v20, 1 }
 0x102   : > { %684 = vpush %v415_v44 }
 0x103   : > { %v508_v48 = vadd.f32 %v507_v45, %v506_v20 }
 0x105   : > { %686 = vpush %v508_v48 }
 0x116   : > { %s681_s11 = spop %680 }
 0x117   : > { %v513_v54 = vstv %s681_s11 }
 0x118   : > { %v514_v23 = vsel %vm512_vm12, %v513_v54, 0.0 }
 0x119   : > { %v518_v58 = vadd.f32 %v517_v57, %v514_v23 }
 0x132   : > { %s683_s15 = spop %682 }
 0x133   : > { %v520_v53 = vstv %s683_s15  ;;  %s685_s17 = spop %684 }
 0x134   : > { %v521_v59 = vsel %vm519_vm13, %v520_v53, 0.0  ;;  %v524_v60 = vstv %s685_s17 }
 0x135   : > { %v522_v26 = vadd.f32 %v521_v59, %v518_v58  ;;  %v525_v61 = vsel %vm523_vm14, %v524_v60, 0.0 }
 0x136   : > { %s687_s18 = spop %686 }
 0x137   : > { %v526_v4 = vadd.f32 %v525_v61, %v522_v26  ;;  %v528_v8 = vstv %s687_s18 }
 0x138   : > { %v529_v6 = vsel %vm527_vm15, %v528_v8, 0.0 }
 0x139   : > { %v530_v32 = vadd.f32 %v529_v6, %v526_v4 }
 0x13b   : > { %v534_v12 = vadd.f32 %v533_v9, %v530_v32 }
 0x13d   : > { %535 = vst [vmem:[%s242_s21] sm:$0x1] %v534_v12 }
 0x13e PF: > { %s14_s14 = sadd.s32 1, %s813_s14   ;;  %s1095_s12 = smov %s809_s13 }
 0x13f   : > { %p11_p2 = scmp.ge.s32.totalorder %s14_s14, 5   ;;  %s1096_s13 = smov %s1098_s16 }
 0x141   :  { %13 = sbr.rel (!%p11_p2) target bundleno = 2 (0x2), region = 87 }
 0x148   :  { %559 = vsyncpa [#allocation3], 1 }
 0x149   :  { %561 = vsyncpa [#allocation3 + $0x1], 1 }

</bundles_post_ra>
